<compile_context>
chip_gen: v6e
topology: v6e:2x2x1
jax: 0.10.0
libtpu: 0.0.40
codegen_flags: <defaults>
</compile_context>

<pallas_src>
import numpy as np
import jax
import jax.numpy as jnp
from jax.experimental import pallas as pl
from jax.experimental.pallas import tpu as pltpu


_LANE = 128
_MAX_BLOCK_BYTES = 4 << 20      # per-block cap; 4x (in+out double-buffer) <= 16 MiB
_BATCH_COARSEN_BYTES = 2 << 20  # target block size when coarsening over the batch axis
_SMALL_SLAB_BYTES = 256 << 10   # per-channel slabs below this get batch-coarsened DMAs


def _shuffle_copy_kernel(perm_ref, x_ref, o_ref):
    # The channel gather already happened in the input BlockSpec's index_map
    # (which reads perm_ref from SMEM), so the body is a pure VMEM copy.
    del perm_ref
    o_ref[...] = x_ref[...]


def _largest_divisor_leq(n, cap):
    """Largest divisor of n that is <= cap (n, cap small host ints)."""
    cap = max(1, min(n, cap))
    for c in range(cap, 0, -1):
        if n % c == 0:
            return c
    return 1


def _sublane_tile(rows, sub_mult, max_rows):
    """Sublane tile: full dim if it fits, else a sub_mult-multiple (divisor preferred)."""
    if rows <= max_rows:
        return rows
    t = (max_rows // sub_mult) * sub_mult
    c = t
    while c >= sub_mult:
        if rows % c == 0:
            return c
        c -= sub_mult
    return t  # ragged last block, handled by the cdiv grid


def _lane_tile(lanes, max_lanes):
    """Lane tile for the non-128-aligned fallback: full dim or a bounded 128-multiple."""
    if lanes <= max_lanes:
        return lanes
    t = max_lanes
    while t >= _LANE:
        if lanes % t == 0:
            return t
        t -= _LANE
    return max_lanes  # ragged last block


def shuffle_forward(x, perm, dim=0):
    """Forward pass of Shuffle: permute axis `dim + 1` of x by `perm`; logdet = 0."""
    axis = dim + 1
    shape = x.shape
    itemsize = x.dtype.itemsize
    K = shape[axis]
    L = int(np.prod(shape[:axis], dtype=np.int64)) if axis > 0 else 1
    S = int(np.prod(shape[axis + 1:], dtype=np.int64)) if axis + 1 < len(shape) else 1

    perm = perm.astype(jnp.int32)  # SMEM scalar prefetch wants int32

    lane_aligned = (S % _LANE == 0)
    if lane_aligned:
        # Sublane-dense view: (L, K, R, 128).
        rows = S // _LANE
        sub_mult = max(8, 32 // itemsize)            # 8 f32 / 16 bf16 / 32 int8
        row_bytes = _LANE * itemsize
        max_rows = max(sub_mult, (_MAX_BLOCK_BYTES // row_bytes) // sub_mult * sub_mult)
        r_tile = _sublane_tile(rows, sub_mult, max_rows)
        lane_tile = _LANE
        x_r = x.reshape(L, K, rows, _LANE)
        n_tiles = pl.cdiv(rows, r_tile)
    else:
        # Fallback: (L, K, 1, S) with bounded 128-multiple lane tiles (ragged edge OK).
        rows = 1
        r_tile = 1
        max_lanes = max(_LANE, (_MAX_BLOCK_BYTES // itemsize) // _LANE * _LANE)
        lane_tile = _lane_tile(S, max_lanes)
        x_r = x.reshape(L, K, 1, S)
        n_tiles = pl.cdiv(S, lane_tile)

    # Coarsen DMAs over the batch axis when one block already covers a small slab.
    slab_bytes = S * itemsize
    block_bytes = r_tile * lane_tile * itemsize
    if block_bytes == slab_bytes and slab_bytes < _SMALL_SLAB_BYTES and L > 1:
        l_tile = _largest_divisor_leq(L, max(1, _BATCH_COARSEN_BYTES // max(1, slab_bytes)))
    else:
        l_tile = 1
    grid_l = L // l_tile

    block_shape = (l_tile, 1, r_tile, lane_tile)

    if lane_aligned:
        def in_idx(l, k, t, perm_ref):
            return (l, perm_ref[k], t, 0)

        def out_idx(l, k, t, perm_ref):
            return (l, k, t, 0)
    else:
        def in_idx(l, k, t, perm_ref):
            return (l, perm_ref[k], 0, t)

        def out_idx(l, k, t, perm_ref):
            return (l, k, 0, t)

    # Order the grid so the megacore (v7x) shards the largest outer axis; all axes
    # are independent so every dimension is "parallel" (no-op on v5e/v6e).
    if K >= grid_l:
        grid = (K, grid_l, n_tiles)
        in_map = lambda k, l, t, p: in_idx(l, k, t, p)
        out_map = lambda k, l, t, p: out_idx(l, k, t, p)
    else:
        grid = (grid_l, K, n_tiles)
        in_map = lambda l, k, t, p: in_idx(l, k, t, p)
        out_map = lambda l, k, t, p: out_idx(l, k, t, p)

    total_bytes = int(np.prod(shape, dtype=np.int64)) * itemsize

    out_r = pl.pallas_call(
        _shuffle_copy_kernel,
        out_shape=jax.ShapeDtypeStruct(x_r.shape, x.dtype),
        grid_spec=pltpu.PrefetchScalarGridSpec(
            num_scalar_prefetch=1,                 # perm -> SMEM, fed to index_maps
            grid=grid,
            in_specs=[pl.BlockSpec(block_shape, in_map)],
            out_specs=pl.BlockSpec(block_shape, out_map),
        ),
        compiler_params=pltpu.CompilerParams(
            dimension_semantics=("parallel", "parallel", "parallel"),
            vmem_limit_bytes=48 << 20,             # headroom under v7x's 64 MiB physical VMEM
        ),
        cost_estimate=pl.CostEstimate(
            flops=0, transcendentals=0, bytes_accessed=2 * total_bytes,
        ),
    )(perm, x_r)

    out = out_r.reshape(shape)
    # Permutations are volume preserving; return a float logdet to avoid dtype
    # promotion surprises when accumulated with other layers' logdets.
    ldet = jnp.zeros((), dtype=jnp.float32)
    return out, ldet


def shuffle_reverse(y, perm, dim=0):
    """Reverse pass: same kernel driven by the inverse permutation."""
    inv_perm = jnp.argsort(perm).astype(jnp.int32)
    out, _ = shuffle_forward(y, inv_perm, dim=dim)
    return out


# TODO(synk): the lazy `torch.randperm` initialization / buffer registration has no
# in-kernel equivalent; the permutation is built once on the host and passed in.


if __name__ == "__main__":
    key = jax.random.PRNGKey(0)
    fwd = jax.jit(shuffle_forward)

    # Primary test: NCHW, matches the module's typical Glow-style input.
    N, C, H, W = 2, 4, 16, 16
    kx, kp, kx2, kx3 = jax.random.split(key, 4)
    x = jax.random.normal(kx, (N, C, H, W), dtype=jnp.float32)
    perm = jax.random.permutation(kp, C).astype(jnp.int32)
    inv_perm = jnp.argsort(perm)

    out, ldet = fwd(x, perm)
    jax.block_until_ready((out, ldet))

    out_ref = jnp.take(x, perm, axis=1)
    assert out.shape == (N, C, H, W)
    assert jnp.array_equal(out, out_ref)
    assert float(ldet) == 0.0
    # Round-trip through the inverse permutation recovers x.
    back = shuffle_reverse(out, perm)
    assert jnp.array_equal(back, x)

    # Secondary test: non-128-aligned trailing slab (fallback path).
    x2 = jax.random.normal(kx2, (2, 6, 5, 7), dtype=jnp.float32)
    perm2 = jax.random.permutation(kp, 6).astype(jnp.int32)
    out2, _ = fwd(x2, perm2)
    jax.block_until_ready(out2)
    assert jnp.array_equal(out2, jnp.take(x2, perm2, axis=1))

    # Tertiary test: bf16 (sublane packing = 16) on the lane-aligned path.
    x3 = jax.random.normal(kx3, (2, 8, 16, 16), dtype=jnp.bfloat16)
    perm3 = jax.random.permutation(kp, 8).astype(jnp.int32)
    out3, _ = fwd(x3, perm3)
    jax.block_until_ready(out3)
    assert jnp.array_equal(out3, jnp.take(x3, perm3, axis=1))

    print("KERNEL_OK")
</pallas_src>

<mosaic_0001>
module attributes {stable_mosaic.version = 11 : i64} {
  func.func @_shuffle_copy_kernel(%arg0: i32, %arg1: i32, %arg2: i32, %arg3: memref<4xi32, #tpu.memory_space<smem>>, %arg4: memref<2x1x2x128xf32, #tpu.memory_space<vmem>>, %arg5: memref<2x1x2x128xf32, #tpu.memory_space<vmem>>) attributes {dimension_semantics = [#tpu.dimension_semantics<parallel>, #tpu.dimension_semantics<parallel>, #tpu.dimension_semantics<parallel>], iteration_bounds = array<i64: 4, 1, 1>, scalar_prefetch = 1 : i64, scratch_operands = 0 : i64, tpu.core_type = #tpu.core_type<tc>, window_params = [{transform_indices = @transform_0, window_bounds = array<i64: 2, 1, 2, 128>}, {transform_indices = @transform_1, window_bounds = array<i64: 2, 1, 2, 128>}]} {
    %c0 = arith.constant 0 : index
    %c0_0 = arith.constant 0 : index
    %c0_1 = arith.constant 0 : index
    %c0_2 = arith.constant 0 : index
    %0 = vector.load %arg4[%c0, %c0_0, %c0_1, %c0_2] : memref<2x1x2x128xf32, #tpu.memory_space<vmem>>, vector<2x1x2x128xf32>
    %c0_3 = arith.constant 0 : index
    %c0_4 = arith.constant 0 : index
    %c0_5 = arith.constant 0 : index
    %c0_6 = arith.constant 0 : index
    %1 = vector.load %arg5[%c0_3, %c0_4, %c0_5, %c0_6] : memref<2x1x2x128xf32, #tpu.memory_space<vmem>>, vector<2x1x2x128xf32>
    tpu.vector_store %arg5[%c0_3, %c0_4, %c0_5, %c0_6], %0 {strides = array<i32>} : memref<2x1x2x128xf32, #tpu.memory_space<vmem>>, vector<2x1x2x128xf32>,
    return
  }
  func.func @transform_0(%arg0: i32, %arg1: i32, %arg2: i32, %arg3: memref<4xi32, #tpu.memory_space<smem>>) -> (i32, i32, i32, i32) {
    %0 = arith.index_cast %arg0 : i32 to index
    %1 = memref.load %arg3[%0] : memref<4xi32, #tpu.memory_space<smem>>
    %c0_i32 = arith.constant 0 : i32
    %c0_i32_0 = arith.constant 0 : i32
    return %arg1, %1, %arg2, %c0_i32 : i32, i32, i32, i32
  }
  func.func @transform_1(%arg0: i32, %arg1: i32, %arg2: i32, %arg3: memref<4xi32, #tpu.memory_space<smem>>) -> (i32, i32, i32, i32) {
    %c0_i32 = arith.constant 0 : i32
    %c0_i32_0 = arith.constant 0 : i32
    return %arg1, %arg0, %arg2, %c0_i32 : i32, i32, i32, i32
  }
}

</mosaic_0001>

<bundles_post_ra>
// kernel: shuffle_forward.1
= control target key start
LH: loop header
LB: loop body
LE: loop exit
PB: predicated region body
PF: predicated region fallthrough
CT: control target
= control target key end

     0   :  { %s578_s0 = inlined_call_operand.vmem [shape: s32[4], index: 0, kind: input, shape index: {}]   ;;  %s579_s1 = inlined_call_operand.vmem [shape: f32[2,4,2,128], index: 1, kind: input, shape index: {}]   ;;  %s580_s2 = inlined_call_operand.vmem [shape: f32[2,4,2,128], index: 2, kind: output, shape index: {}]  }
   0x1   :  { %s7_s11 = sshll.u32 %s578_s0, 4  ;;  %s8_s11 = int_to_ptr.vmem [resolvable:$true] %s7_s11 }
   0x2   :  { %s392_s12 = scalar_lea.vmem %s8_s11, 16  ;;  %p397_p1 = scmp.lt.s32.totalorder %s8_s11, %s8_s11 }
   0x3   :  { %p393_p0 = scmp.ne.s32.totalorder %s8_s11, %s392_s12  ;;  %p398_p2 = scmp.lt.s32.totalorder %s392_s12, %s392_s12 }
   0x5   :  { %p399_p3 = por %p398_p2, %p397_p1 }
   0x7   :  { %p400_p4 = pnand %p399_p3, %p393_p0 }
   0x9   :  { %403 = shalt.err (!%p400_p4)  }
   0xa   :  { %s462_s13 = smov [#allocation3]  }
   0xb   :  { %10 = dma.vmem_to_smem %s8_s11, 16, %s462_s13, [#allocation2] }
   0xc   :  { %432 = dma.done.wait [#allocation2], 16 }
   0xd   :  { %433 = vsyncadd [#allocation2], 4294967280 }
   0xe   :  { %12 = sfence }
   0xf   :  { %s481_s14 = smov 0   ;;  %s483_s15 = smov 0  }
  0x10   :  { %s485_s16 = smov 0   ;;  %s487_s0 = smov 0  }
  0x11   :  { %s489_s17 = smov 0   ;;  %s491_s18 = smov 0  }
  0x12   :  { %s493_s19 = smov 0  }
  0x13 LB: > { %s37_s20 = sadd.s32 1, %s456_s18  ;;  %s322_s21 = sadd.s32 4294967295, %s460_s19   ;;  %s460_s19 = sphi %s493_s19, %s18_s19   ;;  %s456_s18 = sphi %s491_s18, %s587_s18   ;;  %s452_s17 = sphi %s489_s17, %s586_s17   ;;  %s448_s0 = sphi %s487_s0, %s585_s0   ;;  %s444_s16 = sphi %s485_s16, %s584_s16   ;;  %s440_s15 = sphi %s483_s15, %s583_s15   ;;  %s436_s14 = sphi %s481_s14, %s582_s14  }
  0x14   : > { %p39_p5 = scmp.ge.s32.totalorder %s37_s20, 4  ;;  %s41_s22 = sld [smem:[#allocation3 + %s456_s18]] }
  0x15   : > { %p57_p6 = scmp.ne.s32.totalorder %s448_s0, %s444_s16  ;;  %p58_p7 = scmp.eq.s32.totalorder %s460_s19, 0 }
  0x16   : > { %s589_s20 = smov (%p39_p5, %s37_s20), 0  ;;  %s80_s23 = sadd.s32 1, %s440_s15 }
  0x17   : > { %s42_s24 = sld [smem:[#allocation3 + %s589_s20]]  ;;  %s74_s25 = ssub.s32 %s456_s18, %s589_s20 }
  0x18   : > { %p59_p8 = por %p58_p7, %p57_p6  ;;  %p78_p9 = scmp.eq.s32.totalorder %s74_s25, 0 }
  0x19   : > { %p90_p10 = scmp.ne.s32.totalorder %s440_s15, %s436_s14  ;;  %p91_p11 = scmp.eq.s32.totalorder %s322_s21, 3 }
  0x1a   : > { %s531_s26 = scalar_select %p78_p9, %s440_s15, %s80_s23  }
  0x1b   : > { %p533_p12 = por %p91_p11, %p90_p10  ;;  %s50_s29 = sadd.s32 1, %s448_s0 }
  0x1c   : > { %p325_p0 = scmp.ge.s32.totalorder %s460_s19, 4 }
  0x1d   : > { %s44_s28 = ssub.s32 %s41_s22, %s42_s24 }
  0x1e   : > { %p48_p13 = scmp.eq.s32.totalorder %s44_s28, 0  ;;  %113 = sbr.rel (%p325_p0) target bundleno = 46 (0x2e), region = 16 }
  0x20   : > { %s539_s30 = scalar_select %p48_p13, %s448_s0, %s50_s29  }
  0x23   : > { %116 = sbr.rel (!%p59_p8) target bundleno = 46 (0x2e), region = 20  ;;  %s118_s3 = sand.u32 (%p59_p8), 1, %s448_s0  }
  0x24   : > { %s121_s4 = sld [smem:[#allocation3 + %s456_s18]] (%p59_p8)  ;;  %s326_s5 = sshll.u32 (%p59_p8), %s118_s3, 2 }
  0x25   : > { %s120_s10 = scalar_lea.vmem (%p59_p8), [#allocation4], %s326_s5 }
  0x2a   : > { %s327_s6 = sshll.u32 %s121_s4, 1 }
  0x2b   : > { %s127_s9 = scalar_lea.vmem %s579_s1, %s327_s6 }
  0x2c   : > { %v144_v0 = vld [vmem:[%s127_s9] sm:$0x3]  ;;  %v146_v1 = vld [vmem:[%s127_s9 + $0x8] sm:$0x3] }
  0x2d   : > { %145 = vst [vmem:[%s120_s10] sm:$0x3] %v144_v0  ;;  %147 = vst [vmem:[%s120_s10 + $0x2] sm:$0x3] %v146_v1 }
  0x2e PF: > { %p328_p1 = scmp.ge.s32.totalorder %s460_s19, 1  ;;  %p166_p2 = scmp.lt.s32.totalorder %s460_s19, 5 }
  0x30   : > { %p167_p3 = pnand %p328_p1, %p166_p2 }
  0x31   : > { %s173_s11 = sand.u32 (!%p167_p3), 1, %s444_s16   ;;  %s188_s12 = sand.u32 (!%p167_p3), 1, %s436_s14  }
  0x32   : > { %170 = sbr.rel (%p167_p3) target bundleno = 65 (0x41), region = 54  ;;  %s329_s13 = sshll.u32 (!%p167_p3), %s173_s11, 2 }
  0x33   : > { %s330_s21 = sshll.u32 (!%p167_p3), %s188_s12, 2  ;;  %s175_s22 = scalar_lea.vmem (!%p167_p3), [#allocation4], %s329_s13 }
  0x34   : > { %s190_s23 = scalar_lea.vmem (!%p167_p3), [#allocation5], %s330_s21 }
  0x37   : > { %v194_v2 = vld [vmem:[%s175_s22] sm:$0xf]   ;;  %204 = sbr.rel (!%p533_p12) target bundleno = 65 (0x41), region = 62  ;;  %s332_s24 = sshll.u32 (%p533_p12), %s452_s17, 1 }
  0x38   : > { %196 = vst [vmem:[%s190_s23] sm:$0xf] %v194_v2   ;;  %s210_s29 = scalar_lea.vmem (%p533_p12), %s580_s2, %s332_s24 }
  0x3f   : > { %v227_v3 = vld [vmem:[%s190_s23] sm:$0x3]  ;;  %v229_v4 = vld [vmem:[%s190_s23 + $0x2] sm:$0x3] }
  0x40   : > { %228 = vst [vmem:[%s210_s29] sm:$0x3] %v227_v3  ;;  %230 = vst [vmem:[%s210_s29 + $0x8] sm:$0x3] %v229_v4 }
  0x41 PF: > { %s18_s19 = sadd.s32 1, %s460_s19   ;;  %s582_s14 = smov %s440_s15 }
  0x42   : > { %p15_p4 = scmp.ge.s32.totalorder %s18_s19, 6   ;;  %s583_s15 = smov %s531_s26 }
  0x43   : > { %s584_s16 = smov %s448_s0  ;;  %s585_s0 = smov %s539_s30 }
  0x44   : > { %s586_s17 = smov %s456_s18  ;;  %s587_s18 = smov %s589_s20 }
  0x45   :  { %17 = sbr.rel (!%p15_p4) target bundleno = 19 (0x13), region = 127 }

</bundles_post_ra>
